<compile_context>
chip_gen: v6e
topology: v6e:2x2x1
jax: 0.10.0
libtpu: 0.0.40
codegen_flags: <defaults>
</compile_context>

<pallas_src>
import jax
import jax.numpy as jnp
from jax.experimental import pallas as pl
from jax.experimental.pallas import tpu as pltpu


def _round_up(x, m):
    return ((x + m - 1) // m) * m


def _vmem_budget_bytes():
    """Generation-aware VMEM working budget (~75% of physical capacity)."""
    cap = 64 * 1024 * 1024                  # conservative fallback (v7x per-core)
    try:
        cap = int(pltpu.get_tpu_info().vmem_capacity_bytes)
    except Exception:
        pass
    return max(32 * 1024 * 1024, (cap * 3) // 4)


def _spec(shape, index_map, buffer_count=None):
    """BlockSpec with an optional pipeline-depth hint; graceful fallback."""
    if buffer_count is not None:
        try:
            return pl.BlockSpec(shape, index_map,
                                pipeline_mode=pl.Buffered(buffer_count))
        except (TypeError, AttributeError):
            pass
    return pl.BlockSpec(shape, index_map)


def _fast_glu_kernel(x_ref, w_ref, b_ref, o_ref):
    tn = o_ref.shape[-1]                      # lane-dense: tn % 128 == 0
    x = x_ref[...]
    if x.dtype != w_ref.dtype:                # bf16 MXU path: cast the tile here,
        x = x.astype(w_ref.dtype)             # not in the wrapper (saves HBM traffic)
    # Fused MXU matmul, f32 accumulation: y = x @ [W_gate_j | W_val_j] + b_j
    y = jnp.dot(x, w_ref[...], preferred_element_type=jnp.float32)
    y = y + b_ref[...]
    gate_pre = y[:, :tn]                      # lane-aligned static slices
    val = y[:, tn:]
    # Exact sigmoid with ONE EUP op; epilogue stays f32 (v5e has no bf16 VPU/EUP).
    gate = 0.5 * jnp.tanh(0.5 * gate_pre) + 0.5
    o_ref[...] = (val * gate).astype(o_ref.dtype)


def prepare_fast_glu_params(w, b, compute_dtype=None, col_tile=None):
    """One-time parameter prep (hoisted out of the per-call path).

    w: (2*in_size, in_size) in PyTorch nn.Linear layout; b: (2*in_size,).
    Returns (w_fused, b_fused, in_size, col_tile) where w_fused is (K, 2K),
    K = round_up(in_size, 128), with columns grouped per column tile j of
    width col_tile as [gate_j | val_j].  col_tile == K  <=>  the whole fused
    weight stays VMEM-resident; otherwise it is streamed per N-tile.
    """
    two_in, in_size = w.shape
    assert two_in == 2 * in_size
    assert b.shape == (two_in,)
    if compute_dtype is None:
        compute_dtype = w.dtype
    K = _round_up(in_size, 128)
    w_bytes = jnp.dtype(compute_dtype).itemsize

    if col_tile is None:
        budget = _vmem_budget_bytes()
        if K * 2 * K * w_bytes <= budget // 2:
            col_tile = K                       # resident-weight path
        else:                                  # stream weight column tiles
            col_tile = 128
            for cand in (1024, 512, 256):
                if K % cand == 0 and 2 * K * 2 * cand * w_bytes <= budget // 2:
                    col_tile = cand
                    break
    assert K % col_tile == 0 and col_tile % 128 == 0

    w_gate = jnp.zeros((K, K), compute_dtype).at[:in_size, :in_size].set(
        w[:in_size, :].T.astype(compute_dtype))
    w_val = jnp.zeros((K, K), compute_dtype).at[:in_size, :in_size].set(
        w[in_size:, :].T.astype(compute_dtype))
    b_gate = jnp.zeros((K,), jnp.float32).at[:in_size].set(
        b[:in_size].astype(jnp.float32))
    b_val = jnp.zeros((K,), jnp.float32).at[:in_size].set(
        b[in_size:].astype(jnp.float32))

    nt = K // col_tile
    w_fused = jnp.stack(
        [w_gate.reshape(K, nt, col_tile), w_val.reshape(K, nt, col_tile)],
        axis=2).reshape(K, 2 * K)
    b_fused = jnp.stack(
        [b_gate.reshape(nt, col_tile), b_val.reshape(nt, col_tile)],
        axis=1).reshape(1, 2 * K)
    return w_fused, b_fused, in_size, col_tile


def fast_glu(x, w_fused, b_fused, in_size, col_tile):
    """x: (B, in_size); params from prepare_fast_glu_params. Returns (B, in_size)."""
    B, feat = x.shape
    assert feat == in_size
    K = w_fused.shape[0]
    tn = col_tile
    num_n = K // tn
    assert w_fused.shape == (K, 2 * K)
    assert b_fused.shape == (1, 2 * K)

    w_dtype = w_fused.dtype
    x_dtype = x.dtype
    out_dtype = x.dtype
    w_bytes = jnp.dtype(w_dtype).itemsize
    x_bytes = jnp.dtype(x_dtype).itemsize
    out_bytes = jnp.dtype(out_dtype).itemsize
    cast_in_kernel = (x_dtype != w_dtype)

    budget = _vmem_budget_bytes()
    resident = (num_n == 1)
    w_bufs = 1 if resident else 2
    b_bufs = 1 if resident else 2

    # --- explicit VMEM accounting -------------------------------------------
    fixed_bytes = (K * 2 * tn * w_bytes * w_bufs          # fused weight buffers
                   + 2 * tn * 4 * b_bufs                  # bias buffers
                   + (2 << 20))                           # compiler scratch margin
    per_row_bytes = (K * x_bytes * 2                      # double-buffered x tile
                     + tn * out_bytes * 2                 # double-buffered out tile
                     + 2 * tn * 4                         # (tm, 2*tn) f32 intermediate
                     + (K * w_bytes if cast_in_kernel else 0))   # in-kernel cast copy

    # --- waste-aware batch tile ----------------------------------------------
    sublane = {4: 8, 2: 16, 1: 32}.get(x_bytes, 8)
    cands = [c for c in (4096, 2048, 1024, 768, 512, 384, 256, 128, 64, 32, 16, 8)
             if c % sublane == 0]
    if sublane not in cands:
        cands.append(sublane)
    feasible = [c for c in cands if fixed_bytes + c * per_row_bytes <= budget]
    if not feasible:
        feasible = [min(cands)]
    best_key, tm = None, min(feasible)
    for c in feasible:
        steps = -(-B // c)
        padded = steps * c
        # minimize padded batch; then prefer >=2 (even) grid steps so v7x's two
        # TensorCores stay balanced; then the largest tile.
        key = (padded, 1 if steps == 1 else 0,
               steps % 2 if steps > 1 else 0, -c)
        if best_key is None or key < best_key:
            best_key, tm = key, c
    B_pad = _round_up(B, tm)
    num_m = B_pad // tm

    # Deepen the x pipeline in the x-HBM-bound regime if freed VMEM pays for it.
    x_bufs = 2
    if resident and num_m >= 3 and K <= 768 and \
            fixed_bytes + tm * (per_row_bytes + K * x_bytes) <= budget:
        x_bufs = 3
    total_bytes = fixed_bytes + tm * per_row_bytes + (x_bufs - 2) * tm * K * x_bytes
    vmem_limit = int(min(budget, max(total_bytes + (8 << 20), 16 << 20)))

    # --- pad x only when actually needed (zero-copy pass-through otherwise) --
    if (B_pad, K) != (B, feat):
        x_in = jnp.pad(x, ((0, B_pad - B), (0, K - feat)))
    else:
        x_in = x

    cost = pl.CostEstimate(
        flops=4 * B * in_size * in_size,
        transcendentals=B * in_size,
        bytes_accessed=int(w_fused.size * w_bytes + b_fused.size * 4
                           + B * in_size * x_bytes + B * in_size * out_bytes),
    )

    def build(with_hints):
        in_specs = [
            _spec((tm, K), lambda i, j: (i, 0),
                  x_bufs if (with_hints and x_bufs != 2) else None),
            _spec((K, 2 * tn), lambda i, j: (0, j),
                  w_bufs if (with_hints and w_bufs == 1) else None),
            _spec((1, 2 * tn), lambda i, j: (0, j),
                  b_bufs if (with_hints and b_bufs == 1) else None),
        ]
        return pl.pallas_call(
            _fast_glu_kernel,
            out_shape=jax.ShapeDtypeStruct((B_pad, K), out_dtype),
            grid=(num_m, num_n),
            in_specs=in_specs,
            out_specs=pl.BlockSpec((tm, tn), lambda i, j: (i, j)),
            compiler_params=pltpu.CompilerParams(
                dimension_semantics=("parallel", "parallel"),
                vmem_limit_bytes=vmem_limit,
            ),
            cost_estimate=cost,
        )

    try:
        out = build(True)(x_in, w_fused, b_fused)
    except Exception:
        # Fallback without pipeline-depth hints (older JAX / unsupported Buffered).
        out = build(False)(x_in, w_fused, b_fused)

    if (B_pad, K) != (B, in_size):
        out = out[:B, :in_size]
    return out


def fast_glu_ref(x, w, b):
    """Pure-JAX reference mirroring the PyTorch forward."""
    in_size = x.shape[1]
    y = x @ w.T + b
    return y[:, in_size:] * jax.nn.sigmoid(y[:, :in_size])


if __name__ == "__main__":
    key = jax.random.PRNGKey(0)
    kx, kw, kb, kx2, kw2, kb2 = jax.random.split(key, 6)

    # Small shapes consistent with the module: x (B, in_size).
    B, in_size = 8, 32
    x = jax.random.normal(kx, (B, in_size), dtype=jnp.float32)
    # TODO(synk): PyTorch uses orthogonal init with std=sqrt(2); plain Gaussian init here.
    w = jax.random.normal(kw, (2 * in_size, in_size), dtype=jnp.float32) * 0.1
    b = jax.random.normal(kb, (2 * in_size,), dtype=jnp.float32) * 0.1

    ref = fast_glu_ref(x, w, b)

    # f32 resident-weight path (exact tanh-form sigmoid -> tight tolerance).
    w_f32, b_f32, d, ct = prepare_fast_glu_params(w, b)
    out = fast_glu(x, w_f32, b_f32, d, ct)
    jax.block_until_ready(out)
    assert out.shape == (B, in_size)
    assert jnp.allclose(out, ref, atol=2e-3, rtol=2e-3)

    # bf16 MXU path: weights bf16, x cast in-kernel, f32 accumulation + epilogue.
    w_bf, b_bf, d, ct = prepare_fast_glu_params(w, b, compute_dtype=jnp.bfloat16)
    out_bf = fast_glu(x, w_bf, b_bf, d, ct)
    jax.block_until_ready(out_bf)
    assert out_bf.shape == (B, in_size)
    assert jnp.allclose(out_bf, ref, atol=5e-2, rtol=5e-2)

    # N-streamed weight path (forced col_tile) with batch/feature padding.
    B2, in2 = 10, 160
    x2 = jax.random.normal(kx2, (B2, in2), dtype=jnp.float32)
    w2 = jax.random.normal(kw2, (2 * in2, in2), dtype=jnp.float32) * 0.05
    b2 = jax.random.normal(kb2, (2 * in2,), dtype=jnp.float32) * 0.1
    ref2 = fast_glu_ref(x2, w2, b2)
    w2f, b2f, d2, ct2 = prepare_fast_glu_params(w2, b2, col_tile=128)
    out2 = fast_glu(x2, w2f, b2f, d2, ct2)
    jax.block_until_ready(out2)
    assert out2.shape == (B2, in2)
    assert jnp.allclose(out2, ref2, atol=2e-3, rtol=2e-3)

    print("KERNEL_OK")
</pallas_src>

<mosaic_0001>
module attributes {stable_mosaic.version = 11 : i64} {
  func.func @_fast_glu_kernel(%arg0: i32, %arg1: i32, %arg2: memref<8x128xf32, #tpu.memory_space<vmem>>, %arg3: memref<128x256xf32, #tpu.memory_space<vmem>>, %arg4: memref<1x256xf32, #tpu.memory_space<vmem>>, %arg5: memref<8x128xf32, #tpu.memory_space<vmem>>) attributes {dimension_semantics = [#tpu.dimension_semantics<parallel>, #tpu.dimension_semantics<parallel>], iteration_bounds = array<i64: 1, 1>, scalar_prefetch = 0 : i64, scratch_operands = 0 : i64, tpu.core_type = #tpu.core_type<tc>, window_params = [{transform_indices = @transform_0, window_bounds = array<i64: 8, 128>}, {pipeline_mode = #tpu.pipeline_mode<synchronous>, transform_indices = @transform_1, window_bounds = array<i64: 128, 256>}, {pipeline_mode = #tpu.pipeline_mode<synchronous>, transform_indices = @transform_2, window_bounds = array<i64: 1, 256>}, {transform_indices = @transform_3, window_bounds = array<i64: 8, 128>}]} {
    %c0 = arith.constant 0 : index
    %c0_0 = arith.constant 0 : index
    %0 = vector.load %arg2[%c0, %c0_0] : memref<8x128xf32, #tpu.memory_space<vmem>>, vector<8x128xf32>
    %c0_1 = arith.constant 0 : index
    %c0_2 = arith.constant 0 : index
    %1 = vector.load %arg3[%c0_1, %c0_2] : memref<128x256xf32, #tpu.memory_space<vmem>>, vector<128x256xf32>
    %cst = arith.constant dense<0.000000e+00> : vector<8x256xf32>
    %2 = tpu.matmul %0, %1, %cst {dimension_numbers = #tpu.dot_dimension_numbers<[1], [0], [0], [1], [0, 0, 1, 1], [], []>} : vector<8x128xf32>, vector<128x256xf32>, vector<8x256xf32> -> vector<8x256xf32>
    %c0_3 = arith.constant 0 : index
    %c0_4 = arith.constant 0 : index
    %3 = vector.load %arg4[%c0_3, %c0_4] : memref<1x256xf32, #tpu.memory_space<vmem>>, vector<1x256xf32>
    %4 = vector.broadcast %3 : vector<1x256xf32> to vector<8x256xf32>
    %5 = arith.addf %2, %4 : vector<8x256xf32>
    %6 = vector.extract_strided_slice %5 {offsets = [0, 0], sizes = [8, 128], strides = [1, 1]} : vector<8x256xf32> to vector<8x128xf32>
    %7 = vector.extract_strided_slice %5 {offsets = [0, 128], sizes = [8, 128], strides = [1, 1]} : vector<8x256xf32> to vector<8x128xf32>
    %cst_5 = arith.constant 5.000000e-01 : f32
    %8 = vector.broadcast %cst_5 : f32 to vector<8x128xf32>
    %9 = arith.mulf %8, %6 : vector<8x128xf32>
    %10 = math.tanh %9 : vector<8x128xf32>
    %cst_6 = arith.constant 5.000000e-01 : f32
    %11 = vector.broadcast %cst_6 : f32 to vector<8x128xf32>
    %12 = arith.mulf %11, %10 : vector<8x128xf32>
    %cst_7 = arith.constant 5.000000e-01 : f32
    %13 = vector.broadcast %cst_7 : f32 to vector<8x128xf32>
    %14 = arith.addf %12, %13 : vector<8x128xf32>
    %15 = arith.mulf %7, %14 : vector<8x128xf32>
    %c0_8 = arith.constant 0 : index
    %c0_9 = arith.constant 0 : index
    %16 = vector.load %arg5[%c0_8, %c0_9] : memref<8x128xf32, #tpu.memory_space<vmem>>, vector<8x128xf32>
    tpu.vector_store %arg5[%c0_8, %c0_9], %15 {strides = array<i32>} : memref<8x128xf32, #tpu.memory_space<vmem>>, vector<8x128xf32>,
    return
  }
  func.func @transform_0(%arg0: i32, %arg1: i32) -> (i32, i32) {
    %c0_i32 = arith.constant 0 : i32
    %c0_i32_0 = arith.constant 0 : i32
    return %arg0, %c0_i32 : i32, i32
  }
  func.func @transform_1(%arg0: i32, %arg1: i32) -> (i32, i32) {
    %c0_i32 = arith.constant 0 : i32
    %c0_i32_0 = arith.constant 0 : i32
    return %c0_i32, %arg1 : i32, i32
  }
  func.func @transform_2(%arg0: i32, %arg1: i32) -> (i32, i32) {
    %c0_i32 = arith.constant 0 : i32
    %c0_i32_0 = arith.constant 0 : i32
    return %c0_i32, %arg1 : i32, i32
  }
  func.func @transform_3(%arg0: i32, %arg1: i32) -> (i32, i32) {
    %c0_i32 = arith.constant 0 : i32
    return %arg0, %arg1 : i32, i32
  }
}

module attributes {stable_mosaic.version = 11 : i64} {
  func.func @_fast_glu_kernel(%arg0: i32, %arg1: i32, %arg2: memref<8x128xf32, #tpu.memory_space<vmem>>, %arg3: memref<128x256xf32, #tpu.memory_space<vmem>>, %arg4: memref<1x256xf32, #tpu.memory_space<vmem>>, %arg5: memref<8x128xf32, #tpu.memory_space<vmem>>) attributes {dimension_semantics = [#tpu.dimension_semantics<parallel>, #tpu.dimension_semantics<parallel>], iteration_bounds = array<i64: 1, 1>, scalar_prefetch = 0 : i64, scratch_operands = 0 : i64, tpu.core_type = #tpu.core_type<tc>, window_params = [{transform_indices = @transform_0, window_bounds = array<i64: 8, 128>}, {transform_indices = @transform_1, window_bounds = array<i64: 128, 256>}, {transform_indices = @transform_2, window_bounds = array<i64: 1, 256>}, {transform_indices = @transform_3, window_bounds = array<i64: 8, 128>}]} {
    %c0 = arith.constant 0 : index
    %c0_0 = arith.constant 0 : index
    %0 = vector.load %arg2[%c0, %c0_0] : memref<8x128xf32, #tpu.memory_space<vmem>>, vector<8x128xf32>
    %c0_1 = arith.constant 0 : index
    %c0_2 = arith.constant 0 : index
    %1 = vector.load %arg3[%c0_1, %c0_2] : memref<128x256xf32, #tpu.memory_space<vmem>>, vector<128x256xf32>
    %cst = arith.constant dense<0.000000e+00> : vector<8x256xf32>
    %2 = tpu.matmul %0, %1, %cst {dimension_numbers = #tpu.dot_dimension_numbers<[1], [0], [0], [1], [0, 0, 1, 1], [], []>} : vector<8x128xf32>, vector<128x256xf32>, vector<8x256xf32> -> vector<8x256xf32>
    %c0_3 = arith.constant 0 : index
    %c0_4 = arith.constant 0 : index
    %3 = vector.load %arg4[%c0_3, %c0_4] : memref<1x256xf32, #tpu.memory_space<vmem>>, vector<1x256xf32>
    %4 = vector.broadcast %3 : vector<1x256xf32> to vector<8x256xf32>
    %5 = arith.addf %2, %4 : vector<8x256xf32>
    %6 = vector.extract_strided_slice %5 {offsets = [0, 0], sizes = [8, 128], strides = [1, 1]} : vector<8x256xf32> to vector<8x128xf32>
    %7 = vector.extract_strided_slice %5 {offsets = [0, 128], sizes = [8, 128], strides = [1, 1]} : vector<8x256xf32> to vector<8x128xf32>
    %cst_5 = arith.constant 5.000000e-01 : f32
    %8 = vector.broadcast %cst_5 : f32 to vector<8x128xf32>
    %9 = arith.mulf %8, %6 : vector<8x128xf32>
    %10 = math.tanh %9 : vector<8x128xf32>
    %cst_6 = arith.constant 5.000000e-01 : f32
    %11 = vector.broadcast %cst_6 : f32 to vector<8x128xf32>
    %12 = arith.mulf %11, %10 : vector<8x128xf32>
    %cst_7 = arith.constant 5.000000e-01 : f32
    %13 = vector.broadcast %cst_7 : f32 to vector<8x128xf32>
    %14 = arith.addf %12, %13 : vector<8x128xf32>
    %15 = arith.mulf %7, %14 : vector<8x128xf32>
    %c0_8 = arith.constant 0 : index
    %c0_9 = arith.constant 0 : index
    %16 = vector.load %arg5[%c0_8, %c0_9] : memref<8x128xf32, #tpu.memory_space<vmem>>, vector<8x128xf32>
    tpu.vector_store %arg5[%c0_8, %c0_9], %15 {strides = array<i32>} : memref<8x128xf32, #tpu.memory_space<vmem>>, vector<8x128xf32>,
    return
  }
  func.func @transform_0(%arg0: i32, %arg1: i32) -> (i32, i32) {
    %c0_i32 = arith.constant 0 : i32
    %c0_i32_0 = arith.constant 0 : i32
    return %arg0, %c0_i32 : i32, i32
  }
  func.func @transform_1(%arg0: i32, %arg1: i32) -> (i32, i32) {
    %c0_i32 = arith.constant 0 : i32
    %c0_i32_0 = arith.constant 0 : i32
    return %c0_i32, %arg1 : i32, i32
  }
  func.func @transform_2(%arg0: i32, %arg1: i32) -> (i32, i32) {
    %c0_i32 = arith.constant 0 : i32
    %c0_i32_0 = arith.constant 0 : i32
    return %c0_i32, %arg1 : i32, i32
  }
  func.func @transform_3(%arg0: i32, %arg1: i32) -> (i32, i32) {
    %c0_i32 = arith.constant 0 : i32
    return %arg0, %arg1 : i32, i32
  }
}

</mosaic_0001>

<bundles_post_ra>
// kernel: tpu_custom_call.1
= control target key start
LH: loop header
LB: loop body
LE: loop exit
PB: predicated region body
PF: predicated region fallthrough
CT: control target
= control target key end

     0   :  { %8 = vsyncpa [#allocation3], 0  ;;  %s291_s0 = inlined_call_operand.hbm [shape: f32[8,128], index: 0, kind: input, shape index: {}]   ;;  %s292_s1 = inlined_call_operand.hbm [shape: f32[128,256], index: 1, kind: input, shape index: {}]   ;;  %s293_s2 = inlined_call_operand.vmem [shape: f32[1,256], index: 2, kind: input, shape index: {}]   ;;  %s294_s3 = inlined_call_operand.hbm [shape: f32[8,128], index: 3, kind: output, shape index: {}]  }
   0x1   :  { %9 = vsyncpa [#allocation6], 0 }
   0x2   :  { %10 = vsyncpa [#allocation4], 0  ;;  %s253_s12 = smov [#allocation2]   ;;  %s254_s14 = smov [#allocation5]  }
   0x3   :  { %s17_s13 = sshll.u32 %s253_s12, 4  ;;  %s26_s15 = sshll.u32 %s254_s14, 4  ;;  %s18_s13 = int_to_ptr.vmem [resolvable:$true] %s17_s13  ;;  %s27_s15 = int_to_ptr.vmem [resolvable:$true] %s26_s15 }
   0x4   :  { %s195_s16 = scalar_lea.vmem %s18_s13, 128  ;;  %p200_p1 = scmp.lt.s32.totalorder %s18_s13, %s18_s13 }
   0x5   :  { %p196_p0 = scmp.ne.s32.totalorder %s18_s13, %s195_s16  ;;  %p201_p2 = scmp.lt.s32.totalorder %s195_s16, %s195_s16 }
   0x7   :  { %p202_p3 = por %p201_p2, %p200_p1 }
   0x9   :  { %p203_p4 = pnand %p202_p3, %p196_p0 }
   0xb   :  { %206 = shalt.err (!%p203_p4)
}
   0xc   :  { %20 = dma.hbm_to_vmem [thread:$0]  %s291_s0, 128, %s18_s13, [#allocation3]  }
   0xd   :  { %s215_s19 = scalar_lea.vmem %s27_s15, 4096  ;;  %p220_p6 = scmp.lt.s32.totalorder %s27_s15, %s27_s15 }
   0xe   :  { %p216_p5 = scmp.ne.s32.totalorder %s27_s15, %s215_s19  ;;  %p221_p7 = scmp.lt.s32.totalorder %s215_s19, %s215_s19 }
  0x10   :  { %p222_p8 = por %p221_p7, %p220_p6 }
  0x12   :  { %p223_p9 = pnand %p222_p8, %p216_p5 }
  0x14   :  { %226 = shalt.err (!%p223_p9)
}
  0x15   :  { %s255_s20 = smov 256   ;;  %s256_s21 = smov 16  }
  0x16   :  { %32 = dma.hbm_to_vmem [thread:$0]  %s292_s1, 4096, %s27_s15, [#allocation6], %s255_s20, %s255_s20, %s256_s21  }
  0x17   :  { %247 = dma.done.wait [#allocation3], 128  }
  0x18   :  { %248 = vsyncadd [#allocation3], 4294967168 }
  0x19   :  { %249 = dma.done.wait [#allocation6], 4096  }
  0x1a   :  { %250 = vsyncadd [#allocation6], 4294963200  ;;  %v257_v0 = vmov 0.0   ;;  %v73_v1 = vld [vmem:[#allocation5 + $0xf8] sm:$0xff]  ;;  %v72_v2 = vld [vmem:[#allocation5 + $0xf0] sm:$0xff]  ;;  %v76_v34 = vlaneseq  ;;  %s258_s24 = smov [#allocation7]  }
  0x1b   :  { %150 = vmatprep.mubr.f32.mxu0 %v257_v0  ;;  %v71_v3 = vld [vmem:[#allocation5 + $0xe8] sm:$0xff]  ;;  %86 = vmatprep.subr.mxu0 %v73_v1  ;;  %v70_v4 = vld [vmem:[#allocation5 + $0xe0] sm:$0xff]  ;;  %v69_v5 = vld [vmem:[#allocation5 + $0xd8] sm:$0xff]  ;;  %s169_s25 = sshll.u32 %s258_s24, 4  ;;  %s170_s25 = int_to_ptr.vmem [resolvable:$true] %s169_s25 }
  0x1c   :  { %87 = vmatpush1.msra.mxu0 %v72_v2  ;;  %v68_v6 = vld [vmem:[#allocation5 + $0xd0] sm:$0xff]  ;;  %v67_v7 = vld [vmem:[#allocation5 + $0xc8] sm:$0xff]  ;;  %v66_v8 = vld [vmem:[#allocation5 + $0xc0] sm:$0xff]  ;;  %v77_v35 = vshrl.u32 %v76_v34, 7  ;;  %s227_s26 = scalar_lea.vmem %s170_s25, 128  ;;  %p232_p11 = scmp.lt.s32.totalorder %s170_s25, %s170_s25 }
  0x1d   :  { %88 = vmatprep.subr.mxu0 %v71_v3  ;;  %v65_v9 = vld [vmem:[#allocation5 + $0xb8] sm:$0xff]  ;;  %v64_v10 = vld [vmem:[#allocation5 + $0xb0] sm:$0xff]  ;;  %v63_v11 = vld [vmem:[#allocation5 + $0xa8] sm:$0xff]  ;;  %p228_p10 = scmp.ne.s32.totalorder %s170_s25, %s227_s26  ;;  %p233_p12 = scmp.lt.s32.totalorder %s227_s26, %s227_s26 }
  0x1e   :  { %89 = vmatpush1.msra.mxu0 %v70_v4  ;;  %v62_v12 = vld [vmem:[#allocation5 + $0xa0] sm:$0xff]  ;;  %v61_v13 = vld [vmem:[#allocation5 + $0x98] sm:$0xff]  ;;  %v60_v14 = vld [vmem:[#allocation5 + $0x90] sm:$0xff]  ;;  %v78_v36 = vsub.s32 0, %v77_v35  ;;  %v82_v42 = vsub.s32 1, %v77_v35 }
  0x1f   :  { %90 = vmatprep.subr.mxu0 %v69_v5  ;;  %v59_v15 = vld [vmem:[#allocation5 + $0x88] sm:$0xff]  ;;  %v58_v16 = vld [vmem:[#allocation5 + $0x80] sm:$0xff]  ;;  %v57_v17 = vld [vmem:[#allocation5 + $0x78] sm:$0xff]  ;;  %p234_p13 = por %p233_p12, %p232_p11 }
  0x20   :  { %91 = vmatpush1.msra.mxu0 %v68_v6  ;;  %v56_v18 = vld [vmem:[#allocation5 + $0x70] sm:$0xff]  ;;  %v55_v19 = vld [vmem:[#allocation5 + $0x68] sm:$0xff]  ;;  %v54_v20 = vld [vmem:[#allocation5 + $0x60] sm:$0xff] }
  0x21   :  { %92 = vmatprep.subr.mxu0 %v67_v7  ;;  %v53_v21 = vld [vmem:[#allocation5 + $0x58] sm:$0xff]  ;;  %v52_v22 = vld [vmem:[#allocation5 + $0x50] sm:$0xff]  ;;  %v51_v23 = vld [vmem:[#allocation5 + $0x48] sm:$0xff]  ;;  %p235_p0 = pnand %p234_p13, %p228_p10 }
  0x22   :  { %93 = vmatpush1.msra.mxu0 %v66_v8  ;;  %v50_v24 = vld [vmem:[#allocation5 + $0x40] sm:$0xff]  ;;  %v49_v25 = vld [vmem:[#allocation5 + $0x38] sm:$0xff]  ;;  %v48_v26 = vld [vmem:[#allocation5 + $0x30] sm:$0xff] }
  0x23   :  { %94 = vmatprep.subr.mxu0 %v65_v9  ;;  %v47_v27 = vld [vmem:[#allocation5 + $0x28] sm:$0xff]  ;;  %v46_v28 = vld [vmem:[#allocation5 + $0x20] sm:$0xff]  ;;  %v45_v29 = vld [vmem:[#allocation5 + $0x18] sm:$0xff] }
  0x24   :  { %95 = vmatpush1.msra.mxu0 %v64_v10  ;;  %v44_v30 = vld [vmem:[#allocation5 + $0x10] sm:$0xff]  ;;  %v43_v31 = vld [vmem:[#allocation5 + $0x8] sm:$0xff]  ;;  %v42_v32 = vld [vmem:[#allocation5] sm:$0xff] }
  0x25   :  { %96 = vmatprep.subr.mxu0 %v63_v11  ;;  %v41_v33 = vld [vmem:[#allocation2] sm:$0xff] }
  0x26   :  { %97 = vmatpush1.msra.mxu0 %v62_v12  ;;  %v74_v37 = vld [vmem:[%s293_s2] sm:$0x3] }
  0x27   :  { %98 = vmatprep.subr.mxu0 %v61_v13  ;;  %v79_v38 = vrot.slane %v74_v37, %v78_v36  ;;  %v83_v43 = vrot.slane %v74_v37, %v82_v42 }
  0x28   :  { %99 = vmatpush1.msra.mxu0 %v60_v14 }
  0x29   :  { %100 = vmatprep.subr.mxu0 %v59_v15 }
  0x2a   :  { %101 = vmatpush1.msra.mxu0 %v58_v16 }
  0x2b   :  { %102 = vmatprep.subr.mxu0 %v57_v17 }
  0x2c   :  { %103 = vmatpush1.msra.mxu0 %v56_v18 }
  0x2d   :  { %104 = vmatprep.subr.mxu0 %v55_v19 }
  0x2e   :  { %105 = vmatpush1.msra.mxu0 %v54_v20 }
  0x2f   :  { %106 = vmatprep.subr.mxu0 %v53_v21 }
  0x30   :  { %107 = vmatpush1.msra.mxu0 %v52_v22 }
  0x31   :  { %108 = vmatprep.subr.mxu0 %v51_v23 }
  0x32   :  { %109 = vmatpush1.msra.mxu0 %v50_v24 }
  0x33   :  { %110 = vmatprep.subr.mxu0 %v49_v25 }
  0x34   :  { %111 = vmatpush1.msra.mxu0 %v48_v26 }
  0x35   :  { %112 = vmatprep.subr.mxu0 %v47_v27 }
  0x36   :  { %113 = vmatpush1.msra.mxu0 %v46_v28 }
  0x37   :  { %114 = vmatprep.subr.mxu0 %v45_v29 }
  0x38   :  { %115 = vmatpush1.msra.mxu0 %v44_v30 }
  0x39   :  { %116 = vmatprep.subr.mxu0 %v43_v31 }
  0x3a   :  { %117 = vmatpush1.msra.mxu0 %v42_v32 }
  0x3b   :  { %151 = vmatmul.mubr.f32.vlgmr.msra.gmra.mxu0 %v41_v33 }
  0xfb   :  { %v152_v39 = vpop.f32.mrf.mxu0 }
  0xfc   :  { %v153_v40 = vadd.f32 %v152_v39, %v79_v38 }
  0xfd   :  { %v154_v45 = vpop.f32.mrf.mxu0 }
  0xfe   :  { %v157_v41 = vmul.f32 0.5, %v153_v40  ;;  %v155_v47 = vadd.f32 %v154_v45, %v83_v43 }
 0x100   :  { %185 = vtanh.f32 %v157_v41 }
 0x10d   :  { %v186_v44 = vpop.eup %185 }
 0x10e   :  { %v159_v46 = vmul.f32 0.5, %v186_v44 }
 0x110   :  { %v160_v48 = vadd.f32 0.5, %v159_v46 }
 0x112   :  { %v161_v49 = vmul.f32 %v160_v48, %v155_v47 }
 0x114   :  { %162 = vst [vmem:[#allocation7] sm:$0xff] %v161_v49 }
 0x115   :  { %238 = shalt.err (!%p235_p0)
}
 0x116   :  { %172 = dma.vmem_to_hbm [thread:$0]  %s170_s25, 128, %s294_s3, [#allocation4]  }
 0x117   :  { %251 = dma.done.wait [#allocation4], 128  }
 0x118   :  { %252 = vsyncadd [#allocation4], 4294967168 }
 0x119   :  { %176 = vsyncpa [#allocation3], 1 }
 0x11a   :  { %177 = vsyncpa [#allocation6], 1 }
 0x11b   :  { %178 = vsyncpa [#allocation4], 1 }

// kernel: tpu_custom_call.1
= control target key start
LH: loop header
LB: loop body
LE: loop exit
PB: predicated region body
PF: predicated region fallthrough
CT: control target
= control target key end

     0   :  { %8 = vsyncpa [#allocation3], 0  ;;  %s291_s0 = inlined_call_operand.hbm [shape: f32[8,128], index: 0, kind: input, shape index: {}]   ;;  %s292_s1 = inlined_call_operand.hbm [shape: f32[128,256], index: 1, kind: input, shape index: {}]   ;;  %s293_s2 = inlined_call_operand.vmem [shape: f32[1,256], index: 2, kind: input, shape index: {}]   ;;  %s294_s3 = inlined_call_operand.hbm [shape: f32[8,128], index: 3, kind: output, shape index: {}]  }
   0x1   :  { %9 = vsyncpa [#allocation6], 0 }
   0x2   :  { %10 = vsyncpa [#allocation4], 0  ;;  %s253_s12 = smov [#allocation2]   ;;  %s254_s14 = smov [#allocation5]  }
   0x3   :  { %s17_s13 = sshll.u32 %s253_s12, 4  ;;  %s26_s15 = sshll.u32 %s254_s14, 4  ;;  %s18_s13 = int_to_ptr.vmem [resolvable:$true] %s17_s13  ;;  %s27_s15 = int_to_ptr.vmem [resolvable:$true] %s26_s15 }
   0x4   :  { %s195_s16 = scalar_lea.vmem %s18_s13, 128  ;;  %p200_p1 = scmp.lt.s32.totalorder %s18_s13, %s18_s13 }
   0x5   :  { %p196_p0 = scmp.ne.s32.totalorder %s18_s13, %s195_s16  ;;  %p201_p2 = scmp.lt.s32.totalorder %s195_s16, %s195_s16 }
   0x7   :  { %p202_p3 = por %p201_p2, %p200_p1 }
   0x9   :  { %p203_p4 = pnand %p202_p3, %p196_p0 }
   0xb   :  { %206 = shalt.err (!%p203_p4)
}
   0xc   :  { %20 = dma.hbm_to_vmem [thread:$0]  %s291_s0, 128, %s18_s13, [#allocation3]  }
   0xd   :  { %s215_s19 = scalar_lea.vmem %s27_s15, 4096  ;;  %p220_p6 = scmp.lt.s32.totalorder %s27_s15, %s27_s15 }
   0xe   :  { %p216_p5 = scmp.ne.s32.totalorder %s27_s15, %s215_s19  ;;  %p221_p7 = scmp.lt.s32.totalorder %s215_s19, %s215_s19 }
  0x10   :  { %p222_p8 = por %p221_p7, %p220_p6 }
  0x12   :  { %p223_p9 = pnand %p222_p8, %p216_p5 }
  0x14   :  { %226 = shalt.err (!%p223_p9)
}
  0x15   :  { %s255_s20 = smov 256   ;;  %s256_s21 = smov 16  }
  0x16   :  { %32 = dma.hbm_to_vmem [thread:$0]  %s292_s1, 4096, %s27_s15, [#allocation6], %s255_s20, %s255_s20, %s256_s21  }
  0x17   :  { %247 = dma.done.wait [#allocation3], 128  }
  0x18   :  { %248 = vsyncadd [#allocation3], 4294967168 }
  0x19   :  { %249 = dma.done.wait [#allocation6], 4096  }
  0x1a   :  { %250 = vsyncadd [#allocation6], 4294963200  ;;  %v257_v0 = vmov 0.0   ;;  %v73_v1 = vld [vmem:[#allocation5 + $0xf8] sm:$0xff]  ;;  %v72_v2 = vld [vmem:[#allocation5 + $0xf0] sm:$0xff]  ;;  %v76_v34 = vlaneseq  ;;  %s258_s24 = smov [#allocation7]  }
  0x1b   :  { %150 = vmatprep.mubr.f32.mxu0 %v257_v0  ;;  %v71_v3 = vld [vmem:[#allocation5 + $0xe8] sm:$0xff]  ;;  %86 = vmatprep.subr.mxu0 %v73_v1  ;;  %v70_v4 = vld [vmem:[#allocation5 + $0xe0] sm:$0xff]  ;;  %v69_v5 = vld [vmem:[#allocation5 + $0xd8] sm:$0xff]  ;;  %s169_s25 = sshll.u32 %s258_s24, 4  ;;  %s170_s25 = int_to_ptr.vmem [resolvable:$true] %s169_s25 }
  0x1c   :  { %87 = vmatpush1.msra.mxu0 %v72_v2  ;;  %v68_v6 = vld [vmem:[#allocation5 + $0xd0] sm:$0xff]  ;;  %v67_v7 = vld [vmem:[#allocation5 + $0xc8] sm:$0xff]  ;;  %v66_v8 = vld [vmem:[#allocation5 + $0xc0] sm:$0xff]  ;;  %v77_v35 = vshrl.u32 %v76_v34, 7  ;;  %s227_s26 = scalar_lea.vmem %s170_s25, 128  ;;  %p232_p11 = scmp.lt.s32.totalorder %s170_s25, %s170_s25 }
  0x1d   :  { %88 = vmatprep.subr.mxu0 %v71_v3  ;;  %v65_v9 = vld [vmem:[#allocation5 + $0xb8] sm:$0xff]  ;;  %v64_v10 = vld [vmem:[#allocation5 + $0xb0] sm:$0xff]  ;;  %v63_v11 = vld [vmem:[#allocation5 + $0xa8] sm:$0xff]  ;;  %p228_p10 = scmp.ne.s32.totalorder %s170_s25, %s227_s26  ;;  %p233_p12 = scmp.lt.s32.totalorder %s227_s26, %s227_s26 }
  0x1e   :  { %89 = vmatpush1.msra.mxu0 %v70_v4  ;;  %v62_v12 = vld [vmem:[#allocation5 + $0xa0] sm:$0xff]  ;;  %v61_v13 = vld [vmem:[#allocation5 + $0x98] sm:$0xff]  ;;  %v60_v14 = vld [vmem:[#allocation5 + $0x90] sm:$0xff]  ;;  %v78_v36 = vsub.s32 0, %v77_v35  ;;  %v82_v42 = vsub.s32 1, %v77_v35 }
  0x1f   :  { %90 = vmatprep.subr.mxu0 %v69_v5  ;;  %v59_v15 = vld [vmem:[#allocation5 + $0x88] sm:$0xff]  ;;  %v58_v16 = vld [vmem:[#allocation5 + $0x80] sm:$0xff]  ;;  %v57_v17 = vld [vmem:[#allocation5 + $0x78] sm:$0xff]  ;;  %p234_p13 = por %p233_p12, %p232_p11 }
  0x20   :  { %91 = vmatpush1.msra.mxu0 %v68_v6  ;;  %v56_v18 = vld [vmem:[#allocation5 + $0x70] sm:$0xff]  ;;  %v55_v19 = vld [vmem:[#allocation5 + $0x68] sm:$0xff]  ;;  %v54_v20 = vld [vmem:[#allocation5 + $0x60] sm:$0xff] }
  0x21   :  { %92 = vmatprep.subr.mxu0 %v67_v7  ;;  %v53_v21 = vld [vmem:[#allocation5 + $0x58] sm:$0xff]  ;;  %v52_v22 = vld [vmem:[#allocation5 + $0x50] sm:$0xff]  ;;  %v51_v23 = vld [vmem:[#allocation5 + $0x48] sm:$0xff]  ;;  %p235_p0 = pnand %p234_p13, %p228_p10 }
  0x22   :  { %93 = vmatpush1.msra.mxu0 %v66_v8  ;;  %v50_v24 = vld [vmem:[#allocation5 + $0x40] sm:$0xff]  ;;  %v49_v25 = vld [vmem:[#allocation5 + $0x38] sm:$0xff]  ;;  %v48_v26 = vld [vmem:[#allocation5 + $0x30] sm:$0xff] }
  0x23   :  { %94 = vmatprep.subr.mxu0 %v65_v9  ;;  %v47_v27 = vld [vmem:[#allocation5 + $0x28] sm:$0xff]  ;;  %v46_v28 = vld [vmem:[#allocation5 + $0x20] sm:$0xff]  ;;  %v45_v29 = vld [vmem:[#allocation5 + $0x18] sm:$0xff] }
  0x24   :  { %95 = vmatpush1.msra.mxu0 %v64_v10  ;;  %v44_v30 = vld [vmem:[#allocation5 + $0x10] sm:$0xff]  ;;  %v43_v31 = vld [vmem:[#allocation5 + $0x8] sm:$0xff]  ;;  %v42_v32 = vld [vmem:[#allocation5] sm:$0xff] }
  0x25   :  { %96 = vmatprep.subr.mxu0 %v63_v11  ;;  %v41_v33 = vld [vmem:[#allocation2] sm:$0xff] }
  0x26   :  { %97 = vmatpush1.msra.mxu0 %v62_v12  ;;  %v74_v37 = vld [vmem:[%s293_s2] sm:$0x3] }
  0x27   :  { %98 = vmatprep.subr.mxu0 %v61_v13  ;;  %v79_v38 = vrot.slane %v74_v37, %v78_v36  ;;  %v83_v43 = vrot.slane %v74_v37, %v82_v42 }
  0x28   :  { %99 = vmatpush1.msra.mxu0 %v60_v14 }
  0x29   :  { %100 = vmatprep.subr.mxu0 %v59_v15 }
  0x2a   :  { %101 = vmatpush1.msra.mxu0 %v58_v16 }
  0x2b   :  { %102 = vmatprep.subr.mxu0 %v57_v17 }
  0x2c   :  { %103 = vmatpush1.msra.mxu0 %v56_v18 }
  0x2d   :  { %104 = vmatprep.subr.mxu0 %v55_v19 }
  0x2e   :  { %105 = vmatpush1.msra.mxu0 %v54_v20 }
  0x2f   :  { %106 = vmatprep.subr.mxu0 %v53_v21 }
  0x30   :  { %107 = vmatpush1.msra.mxu0 %v52_v22 }
  0x31   :  { %108 = vmatprep.subr.mxu0 %v51_v23 }
  0x32   :  { %109 = vmatpush1.msra.mxu0 %v50_v24 }
  0x33   :  { %110 = vmatprep.subr.mxu0 %v49_v25 }
  0x34   :  { %111 = vmatpush1.msra.mxu0 %v48_v26 }
  0x35   :  { %112 = vmatprep.subr.mxu0 %v47_v27 }
  0x36   :  { %113 = vmatpush1.msra.mxu0 %v46_v28 }
  0x37   :  { %114 = vmatprep.subr.mxu0 %v45_v29 }
  0x38   :  { %115 = vmatpush1.msra.mxu0 %v44_v30 }
  0x39   :  { %116 = vmatprep.subr.mxu0 %v43_v31 }
  0x3a   :  { %117 = vmatpush1.msra.mxu0 %v42_v32 }
  0x3b   :  { %151 = vmatmul.mubr.f32.vlgmr.msra.gmra.mxu0 %v41_v33 }
  0xfb   :  { %v152_v39 = vpop.f32.mrf.mxu0 }
  0xfc   :  { %v153_v40 = vadd.f32 %v152_v39, %v79_v38 }
  0xfd   :  { %v154_v45 = vpop.f32.mrf.mxu0 }
  0xfe   :  { %v157_v41 = vmul.f32 0.5, %v153_v40  ;;  %v155_v47 = vadd.f32 %v154_v45, %v83_v43 }
 0x100   :  { %185 = vtanh.f32 %v157_v41 }
 0x10d   :  { %v186_v44 = vpop.eup %185 }
 0x10e   :  { %v159_v46 = vmul.f32 0.5, %v186_v44 }
 0x110   :  { %v160_v48 = vadd.f32 0.5, %v159_v46 }
 0x112   :  { %v161_v49 = vmul.f32 %v160_v48, %v155_v47 }
 0x114   :  { %162 = vst [vmem:[#allocation7] sm:$0xff] %v161_v49 }
 0x115   :  { %238 = shalt.err (!%p235_p0)
}
 0x116   :  { %172 = dma.vmem_to_hbm [thread:$0]  %s170_s25, 128, %s294_s3, [#allocation4]  }
 0x117   :  { %251 = dma.done.wait [#allocation4], 128  }
 0x118   :  { %252 = vsyncadd [#allocation4], 4294967168 }
 0x119   :  { %176 = vsyncpa [#allocation3], 1 }
 0x11a   :  { %177 = vsyncpa [#allocation6], 1 }
 0x11b   :  { %178 = vsyncpa [#allocation4], 1 }

</bundles_post_ra>
